<compile_context>
chip_gen: v7x
topology: tpu7x:2x2x1
jax: 0.10.0
libtpu: 0.0.40
codegen_flags: <defaults>
</compile_context>

<pallas_src>
import math

import jax
import jax.numpy as jnp
from jax.experimental import pallas as pl
from jax.experimental.pallas import tpu as pltpu


def _attention_kernel(x_ref, w_ref, o_ref):
    bb, n, dp = x_ref.shape                      # (Bb, N, Dp), static

    # Fused QKV: one wide bf16 MXU pass, f32 accumulation, M = Bb*N rows.
    # (1/sqrt(dim) is already folded into the query columns of w_ref.)
    x2d = x_ref[...].astype(jnp.bfloat16).reshape(bb * n, dp)
    qkv = jnp.dot(x2d, w_ref[...], preferred_element_type=jnp.float32)  # (Bb*N, 3*Dp)

    q = qkv[:, 0 * dp:1 * dp].astype(jnp.bfloat16).reshape(bb, n, dp)
    k = qkv[:, 1 * dp:2 * dp].astype(jnp.bfloat16).reshape(bb, n, dp)
    v = qkv[:, 2 * dp:3 * dp].astype(jnp.bfloat16).reshape(bb, n, dp)

    # Transposed scores: s_t[b, kk, qq] = <K_kk, Q_qq> / sqrt(dim).
    # torch Softmax(dim=1) normalizes over the QUERY axis, which is the last
    # axis here -> lane-axis reductions, no XLU transpose of k.
    s_t = jnp.einsum("bkd,bqd->bkq", k, q, preferred_element_type=jnp.float32)
    m = jnp.max(s_t, axis=-1, keepdims=True)
    e = jnp.exp(s_t - m)
    denom = jnp.sum(e, axis=-1, keepdims=True)
    p_t = e * pl.reciprocal(denom, approx=True)  # EUP slot, effectively free

    # out[b, q, d] = sum_k p_t[b, k, q] * v[b, k, d]  (lhs-transposed matmul,
    # transpose consumed directly by the MXU — no transpose back needed).
    out = jnp.einsum("bkq,bkd->bqd", p_t.astype(jnp.bfloat16), v,
                     preferred_element_type=jnp.float32)
    o_ref[...] = out.astype(o_ref.dtype)


def _pick_block_b(batch, seq):
    """Largest divisor of `batch` giving ~>=128 matmul rows per grid step while
    keeping >=2 grid steps so both v7x TensorCores get work."""
    target = max(1, 128 // max(seq, 1))
    limit = min(target, batch if batch < 2 else max(1, batch // 2))
    best = 1
    for d in range(1, limit + 1):
        if batch % d == 0:
            best = d
    return best


def attention_pallas(x, wq, wk, wv):
    """x: (B, N, D) float32; wq/wk/wv: torch-style (out_features, in_features) = (D, D)."""
    B, N, D = x.shape
    Dp = ((D + 127) // 128) * 128                # lane-dense feature dim
    inv_scale = 1.0 / math.sqrt(D)               # ORIGINAL dim, not padded

    # Fused, pre-transposed (x @ W.T == x @ W_t), zero-padded, bf16 QKV weight.
    # The attention scale is folded into the query columns.
    def pad_wt(w, scale=1.0):
        return jnp.pad(w.T * scale, ((0, Dp - D), (0, Dp - D)))

    w_qkv = jnp.concatenate(
        [pad_wt(wq, inv_scale), pad_wt(wk), pad_wt(wv)], axis=1)
    w_qkv = w_qkv.astype(jnp.bfloat16)           # (Dp, 3*Dp), resident in VMEM

    x_in = jnp.pad(x, ((0, 0), (0, 0), (0, Dp - D))) if Dp != D else x

    Bb = _pick_block_b(B, N)
    grid = (B // Bb,)

    # Explicit VMEM budget (double-buffered x/out blocks + resident weight +
    # in-kernel intermediates) — v7x: 64 MiB physical / 32 MiB scoped default.
    x_blk = Bb * N * Dp * 4
    o_blk = Bb * N * Dp * 4
    w_blk = Dp * 3 * Dp * 2
    inter = Bb * N * 3 * Dp * (4 + 2) + 4 * Bb * N * N * 4
    vmem_limit = int(min(64 << 20,
                         max(32 << 20, 2 * (x_blk + o_blk + w_blk) + inter + (4 << 20))))

    out_padded = pl.pallas_call(
        _attention_kernel,
        out_shape=jax.ShapeDtypeStruct((B, N, Dp), x.dtype),
        grid_spec=pltpu.PrefetchScalarGridSpec(
            num_scalar_prefetch=0,
            grid=grid,
            in_specs=[
                pl.BlockSpec((Bb, N, Dp), lambda b: (b, 0, 0)),   # x, Bb batches per step
                pl.BlockSpec((Dp, 3 * Dp), lambda b: (0, 0)),     # fused W_qkv (resident)
            ],
            out_specs=pl.BlockSpec((Bb, N, Dp), lambda b: (b, 0, 0)),
        ),
        compiler_params=pltpu.CompilerParams(
            dimension_semantics=("parallel",),
            vmem_limit_bytes=vmem_limit,
        ),
    )(x_in, w_qkv)

    return out_padded[:, :, :D] if Dp != D else out_padded


def attention_ref(x, wq, wk, wv):
    """Pure-JAX f32 reference mirroring the PyTorch forward exactly."""
    D = x.shape[-1]
    Q = jnp.einsum("bnd,ed->bne", x, wq)
    K = jnp.einsum("bnd,ed->bne", x, wk)
    V = jnp.einsum("bnd,ed->bne", x, wv)
    s = jnp.einsum("bqd,bkd->bqk", Q, K) / math.sqrt(D)
    s = jax.nn.softmax(s, axis=1)                # torch Softmax(dim=1): query axis
    return jnp.einsum("bqk,bkd->bqd", s, V)


if __name__ == "__main__":
    B, N, D = 2, 8, 32

    key = jax.random.PRNGKey(0)
    kx, kq, kk, kv = jax.random.split(key, 4)

    x = jax.random.normal(kx, (B, N, D), dtype=jnp.float32)
    bound = 1.0 / math.sqrt(D)
    wq = jax.random.uniform(kq, (D, D), minval=-bound, maxval=bound, dtype=jnp.float32)
    wk = jax.random.uniform(kk, (D, D), minval=-bound, maxval=bound, dtype=jnp.float32)
    wv = jax.random.uniform(kv, (D, D), minval=-bound, maxval=bound, dtype=jnp.float32)

    out = attention_pallas(x, wq, wk, wv)
    out = jax.block_until_ready(out)

    ref = attention_ref(x, wq, wk, wv)
    assert out.shape == (B, N, D)
    # bf16 MXU operands (f32 accumulation) -> looser tolerance than pure f32.
    assert jnp.allclose(out, ref, atol=3e-2, rtol=3e-2), "mismatch vs reference"

    print("KERNEL_OK")
</pallas_src>

<mosaic_0001>
module attributes {stable_mosaic.version = 11 : i64} {
  func.func @_attention_kernel(%arg0: i32, %arg1: memref<1x8x128xf32, #tpu.memory_space<vmem>>, %arg2: memref<128x384xbf16, #tpu.memory_space<vmem>>, %arg3: memref<1x8x128xf32, #tpu.memory_space<vmem>>) attributes {dimension_semantics = [#tpu.dimension_semantics<parallel>], iteration_bounds = array<i64: 2>, scalar_prefetch = 0 : i64, scratch_operands = 0 : i64, tpu.core_type = #tpu.core_type<tc>, window_params = [{transform_indices = @transform_0, window_bounds = array<i64: 1, 8, 128>}, {pipeline_mode = #tpu.pipeline_mode<synchronous>, transform_indices = @transform_1, window_bounds = array<i64: 128, 384>}, {transform_indices = @transform_2, window_bounds = array<i64: 1, 8, 128>}]} {
    %c0 = arith.constant 0 : index
    %c0_0 = arith.constant 0 : index
    %c0_1 = arith.constant 0 : index
    %0 = vector.load %arg1[%c0, %c0_0, %c0_1] : memref<1x8x128xf32, #tpu.memory_space<vmem>>, vector<1x8x128xf32>
    %1 = arith.truncf %0 : vector<1x8x128xf32> to vector<1x8x128xbf16>
    %2 = vector.shape_cast %1 : vector<1x8x128xbf16> to vector<8x128xbf16>
    %c0_2 = arith.constant 0 : index
    %c0_3 = arith.constant 0 : index
    %3 = vector.load %arg2[%c0_2, %c0_3] : memref<128x384xbf16, #tpu.memory_space<vmem>>, vector<128x384xbf16>
    %cst = arith.constant dense<0.000000e+00> : vector<8x384xf32>
    %4 = tpu.matmul %2, %3, %cst {dimension_numbers = #tpu.dot_dimension_numbers<[1], [0], [0], [1], [0, 0, 1, 1], [], []>} : vector<8x128xbf16>, vector<128x384xbf16>, vector<8x384xf32> -> vector<8x384xf32>
    %5 = vector.extract_strided_slice %4 {offsets = [0, 0], sizes = [8, 128], strides = [1, 1]} : vector<8x384xf32> to vector<8x128xf32>
    %6 = arith.truncf %5 : vector<8x128xf32> to vector<8x128xbf16>
    %7 = vector.shape_cast %6 : vector<8x128xbf16> to vector<1x8x128xbf16>
    %8 = vector.extract_strided_slice %4 {offsets = [0, 128], sizes = [8, 128], strides = [1, 1]} : vector<8x384xf32> to vector<8x128xf32>
    %9 = arith.truncf %8 : vector<8x128xf32> to vector<8x128xbf16>
    %10 = vector.shape_cast %9 : vector<8x128xbf16> to vector<1x8x128xbf16>
    %11 = vector.extract_strided_slice %4 {offsets = [0, 256], sizes = [8, 128], strides = [1, 1]} : vector<8x384xf32> to vector<8x128xf32>
    %12 = arith.truncf %11 : vector<8x128xf32> to vector<8x128xbf16>
    %13 = vector.shape_cast %12 : vector<8x128xbf16> to vector<1x8x128xbf16>
    "tpu.trace_start"() <{level = 10 : i32, message = "bkd,bqd->bkq"}> : () -> ()
    %cst_4 = arith.constant dense<0.000000e+00> : vector<1x8x8xf32>
    %14 = tpu.matmul %10, %7, %cst_4 {dimension_numbers = #tpu.dot_dimension_numbers<[2], [2], [1], [1], [0, 0, 0, 1, 1, 1], [0], [0]>} : vector<1x8x128xbf16>, vector<1x8x128xbf16>, vector<1x8x8xf32> -> vector<1x8x8xf32>
    "tpu.trace_stop"() : () -> ()
    %cst_5 = arith.constant dense<0xFF800000> : vector<1x8xf32>
    %15 = vector.multi_reduction <maximumf>, %14, %cst_5 [2] : vector<1x8x8xf32> to vector<1x8xf32>
    %16 = vector.shape_cast %15 : vector<1x8xf32> to vector<1x8x1xf32>
    %17 = vector.broadcast %16 : vector<1x8x1xf32> to vector<1x8x8xf32>
    %18 = arith.subf %14, %17 : vector<1x8x8xf32>
    %19 = math.exp %18 : vector<1x8x8xf32>
    %cst_6 = arith.constant dense<0.000000e+00> : vector<1x8xf32>
    %20 = vector.multi_reduction <add>, %19, %cst_6 [2] : vector<1x8x8xf32> to vector<1x8xf32>
    %21 = vector.shape_cast %20 : vector<1x8xf32> to vector<1x8x1xf32>
    %22 = tpu.reciprocal %21 {approx = true} : vector<1x8x1xf32> -> vector<1x8x1xf32>
    %23 = vector.broadcast %22 : vector<1x8x1xf32> to vector<1x8x8xf32>
    %24 = arith.mulf %19, %23 : vector<1x8x8xf32>
    %25 = arith.truncf %24 : vector<1x8x8xf32> to vector<1x8x8xbf16>
    "tpu.trace_start"() <{level = 10 : i32, message = "bkq,bkd->bqd"}> : () -> ()
    %cst_7 = arith.constant dense<0.000000e+00> : vector<1x8x128xf32>
    %26 = tpu.matmul %25, %13, %cst_7 {dimension_numbers = #tpu.dot_dimension_numbers<[1], [1], [2], [2], [0, 0, 0, 2, 1, 2], [0], [0]>} : vector<1x8x8xbf16>, vector<1x8x128xbf16>, vector<1x8x128xf32> -> vector<1x8x128xf32>
    "tpu.trace_stop"() : () -> ()
    %c0_8 = arith.constant 0 : index
    %c0_9 = arith.constant 0 : index
    %c0_10 = arith.constant 0 : index
    %27 = vector.load %arg3[%c0_8, %c0_9, %c0_10] : memref<1x8x128xf32, #tpu.memory_space<vmem>>, vector<1x8x128xf32>
    tpu.vector_store %arg3[%c0_8, %c0_9, %c0_10], %26 {strides = array<i32>} : memref<1x8x128xf32, #tpu.memory_space<vmem>>, vector<1x8x128xf32>,
    return
  }
  func.func @transform_0(%arg0: i32) -> (i32, i32, i32) {
    %c0_i32 = arith.constant 0 : i32
    %c0_i32_0 = arith.constant 0 : i32
    %c0_i32_1 = arith.constant 0 : i32
    return %arg0, %c0_i32, %c0_i32_0 : i32, i32, i32
  }
  func.func @transform_1(%arg0: i32) -> (i32, i32) {
    %c0_i32 = arith.constant 0 : i32
    %c0_i32_0 = arith.constant 0 : i32
    %c0_i32_1 = arith.constant 0 : i32
    return %c0_i32, %c0_i32_0 : i32, i32
  }
  func.func @transform_2(%arg0: i32) -> (i32, i32, i32) {
    %c0_i32 = arith.constant 0 : i32
    %c0_i32_0 = arith.constant 0 : i32
    %c0_i32_1 = arith.constant 0 : i32
    return %arg0, %c0_i32, %c0_i32_0 : i32, i32, i32
  }
}

</mosaic_0001>

<bundles_post_ra>
// kernel: tpu_custom_call.1
= control target key start
LH: loop header
LB: loop body
LE: loop exit
PB: predicated region body
PF: predicated region fallthrough
CT: control target
= control target key end

     0   :  { %7 = vsyncpa [#allocation3], 0  ;;  %s1176_s0 = inlined_call_operand.hbm [shape: f32[2,8,128], index: 0, kind: input, shape index: {}]   ;;  %s1177_s1 = inlined_call_operand.hbm [shape: bf16[128,384], index: 1, kind: input, shape index: {}]   ;;  %s1178_s2 = inlined_call_operand.hbm [shape: f32[2,8,128], index: 2, kind: output, shape index: {}]  }
   0x1   :  { %9 = vsyncpa [#allocation3 + $0x1], 0 }
   0x2   :  { %10 = vsyncpa [#allocation6], 0 }
   0x3   :  { %11 = vsyncpa [#allocation4], 0 }
   0x4   :  { %13 = vsyncpa [#allocation4 + $0x1], 0  ;;  %s967_s9 = smov 0   ;;  %s969_s10 = smov 0  }
   0x5   :  { %s971_s11 = smov 0   ;;  %s973_s12 = smov 0  }
   0x6 LB: > { %s988_s13 = sadd.s32 4294967295, %s942_s12   ;;  %s632_s14 = sadd.s32 4294967294, %s942_s12   ;;  %s942_s12 = sphi %s973_s12, %s1198_s12   ;;  %s938_s11 = sphi %s971_s11, %s1197_s11   ;;  %s934_s10 = sphi %s969_s10, %s1196_s10   ;;  %s930_s9 = sphi %s967_s9, %s1195_s9  }
   0x7   : > { %p39_p0 = scmp.ne.s32.totalorder %s934_s10, %s930_s9  ;;  %p1179_p1 = scmp.eq.s32.totalorder %s988_s13, 0 }
   0x8   : > { %p90_p3 = scmp.eq.s32.totalorder %s632_s14, 1  ;;  %p633_p5 = scmp.ge.s32.totalorder %s942_s12, 1 }
   0x9   : > { %p997_p4 = por %p1179_p1, %p39_p0  ;;  %p97_p7 = scmp.lt.s32.totalorder %s942_s12, 3 }
   0xa   : > { %p1002_p6 = por %p90_p3, %p39_p0  ;;  %s944_s18 = smov [#allocation5]  }
   0xb   : > { %s1182_s15 = scalar_select %p997_p4, 1, 0 }
   0xc   : > { %s1183_s16 = scalar_select %p1002_p6, 1, 0 }
   0xd   : > { %p1007_p8 = pnand %p633_p5, %p97_p7  ;;  %s109_s19 = sshll.u32 %s944_s18, 4  ;;  %s1011_s19 = int_to_ptr.vmem [resolvable:$true] %s109_s19 }
   0xe   : > { %s1023_s21 = sadd.s32 1, %s942_s12   ;;  %s26_s22 = sadd.s32 1, %s938_s11 }
   0xf   : > { %s1184_s17 = scalar_select %p1007_p8, 1, 0 }
  0x10   : > { %p724_p9 = pneg %p1007_p8  ;;  %s23_s23 = ssub.s32 %s942_s12, %s1023_s21 }
  0x11   : > { %s814_s26 = scalar_lea.hbm %s1177_s1, 3072 }
  0x12   : > { %p1018_p11 = pnand %p724_p9, %p1179_p1  ;;  %p815_p12 = scmp.ne.s32.totalorder %s1177_s1, %s814_s26 }
  0x13   : > { %p821_p5 = scmp.lt.u32.totalorder %s814_s26, %s1177_s1 }
  0x14   : > { %p816_p13 = pneg %p1018_p11 }
  0x16   : > { %p817_p0 = pnand %p816_p13, %p815_p12 }
  0x18   : > { %p818_p3 = pneg %p817_p0 }
  0x1a   : > { %p823_p7 = pnand %p821_p5, %p818_p3 }
  0x1c   : > { %826 = shalt.err (!%p823_p7)
}
  0x1d   : > { %s827_s3 = scalar_lea.vmem %s1011_s19, 3072  ;;  %p835_p2 = scmp.lt.s32.totalorder %s1011_s19, %s1011_s19 }
  0x1e   : > { %p828_p9 = scmp.ne.s32.totalorder %s1011_s19, %s827_s3  ;;  %p836_p6 = scmp.lt.s32.totalorder %s827_s3, %s827_s3 }
  0x20   : > { %p830_p10 = pnand %p828_p9, %p816_p13  ;;  %p837_p4 = por %p836_p6, %p835_p2 }
  0x22   : > { %p831_p1 = pneg %p830_p10 }
  0x24   : > { %p838_p8 = pnand %p837_p4, %p831_p1 }
  0x26   : > { %841 = shalt.err (!%p838_p8)
}
  0x27   : > { %s945_s4 = smov 192   ;;  %s946_s5 = smov 12  }
  0x28   : > { %727 = dma.hbm_to_vmem [thread:$0]  (!%p1018_p11), %s1177_s1, 3072, %s1011_s19, [#allocation6], %s945_s4, %s945_s4, %s946_s5  }
  0x29   : > { %p24_p2 = scmp.eq.s32.totalorder %s23_s23, 0  ;;  %p33_p1 = scmp.ne.s32.totalorder %s938_s11, %s934_s10 }
  0x2a   : > { %p34_p4 = scmp.eq.s32.totalorder %s942_s12, 0  ;;  %p737_p6 = scmp.lt.s32.totalorder %s942_s12, 2 }
  0x2b   : > { %s1054_s8 = scalar_select %p24_p2, %s938_s11, %s26_s22  }
  0x2c   : > { %p35_p8 = por %p34_p4, %p33_p1  ;;  %p1186_p10 = scmp.eq.s32.totalorder %s988_s13, 1 }
  0x2d   : > { %s123_s18 = sand.u32 1, %s938_s11   ;;  %s637_s24 = sshll.u32 %s942_s12, 7 }
  0x2e   : > { %p1058_p12 = por %p1186_p10, %p33_p1  ;;  %s636_s25 = sshll.u32 %s123_s18, 3 }
  0x2f   : > { %s1067_s27 = scalar_lea.hbm %s1176_s0, %s637_s24  ;;  %s127_s19 = scalar_lea.vmem [#allocation2], %s636_s25 }
  0x30   : > { %s134_s22 = sshll.u32 %s127_s19, 4  ;;  %p1069_p11 = pnand %p737_p6, %p35_p8  ;;  %s1073_s22 = int_to_ptr.vmem [resolvable:$true] %s134_s22 }
  0x31   : > { %s124_s28 = scalar_lea.sflag [#allocation3], %s123_s18  ;;  %s842_s29 = scalar_lea.hbm %s1067_s27, 128 }
  0x32   : > { %p843_p13 = scmp.ne.s32.totalorder %s1067_s27, %s842_s29  ;;  %p844_p0 = pneg %p1069_p11 }
  0x33   : > { %s847_s4 = scalar_lea.hbm %s1176_s0, 256  ;;  %p848_p7 = scmp.lt.u32.totalorder %s1067_s27, %s1176_s0 }
  0x34   : > { %p845_p3 = pnand %p844_p0, %p843_p13  ;;  %p849_p9 = scmp.lt.u32.totalorder %s847_s4, %s842_s29 }
  0x35   : > { %p851_p1 = scmp.lt.u32.totalorder %s842_s29, %s1067_s27 }
  0x36   : > { %p846_p5 = pneg %p845_p3  ;;  %p850_p2 = por %p849_p9, %p848_p7 }
  0x38   : > { %p852_p4 = por %p851_p1, %p850_p2 }
  0x3a   : > { %p853_p6 = pnand %p852_p4, %p846_p5 }
  0x3c   : > { %856 = shalt.err (!%p853_p6)
}
  0x3d   : > { %s857_s7 = scalar_lea.vmem %s1073_s22, 128  ;;  %s947_s18 = smov [#allocation2]  }
  0x3e   : > { %p858_p8 = scmp.ne.s32.totalorder %s1073_s22, %s857_s7  ;;  %s862_s24 = sshll.u32 %s947_s18, 4  ;;  %s863_s24 = int_to_ptr.vmem [resolvable:$false] %s862_s24 }
  0x3f   : > { %s864_s25 = scalar_lea.vmem %s863_s24, 256  ;;  %p865_p3 = scmp.lt.s32.totalorder %s1073_s22, %s863_s24 }
  0x40   : > { %p860_p10 = pnand %p858_p8, %p844_p0  ;;  %p866_p7 = scmp.lt.s32.totalorder %s864_s25, %s857_s7 }
  0x42   : > { %p861_p13 = pneg %p860_p10  ;;  %p867_p9 = por %p866_p7, %p865_p3 }
  0x44   : > { %p868_p2 = pnand %p867_p9, %p861_p13 }
  0x46   : > { %871 = shalt.err (!%p868_p2)
}
  0x47   : > { %731 = dma.hbm_to_vmem [thread:$0]  (!%p1069_p11), %s1067_s27, 128, %s1073_s22, %s124_s28  }
  0x48   : > { %p1189_p5 = scmp.ne.s32.totalorder %s1184_s17, 0 }
  0x49   : > { %s1103_s20 = sand.u32 (!%p1189_p5), 1, %s934_s10   ;;  %p1190_p0 = scmp.ne.s32.totalorder (!%p1189_p5), %s1182_s15, 0 }
  0x4a   : > { %143 = sbr.rel (%p1189_p5) target bundleno = 1197 (0x4ad), region = 28  ;;  %s639_s26 = sshll.u32 (!%p1189_p5), %s1103_s20, 3 }
  0x4b   : > { %s146_s19 = scalar_lea.sflag (!%p1189_p5), [#allocation3], %s1103_s20  ;;  %s1109_s29 = scalar_lea.vmem (!%p1189_p5), [#allocation2], %s639_s26 }
  0x51   : > { %917 = dma.done.wait (%p1190_p0), %s146_s19, 128  }
  0x52   : > { %919 = vsyncadd (%p1190_p0), %s146_s19, 4294967168  ;;  %p1191_p11 = scmp.eq.s32.totalorder %s988_s13, 0 }
  0x54   : > { %921 = dma.done.wait (%p1191_p11), [#allocation6], 3072   ;;  %p1192_p1 = pmov %p1191_p11 }
  0x55   : > { %v948_v0 = vmov 0   ;;  %v778_v1 = vld [vmem:[#allocation5 + $0x4] ss:$12 sps:$4 sm:$0xff]   ;;  %v780_v2 = vld [vmem:[#allocation5] ss:$12 sps:$4 sm:$0xff]   ;;  %v949_v19 = vmov 0.0  }
  0x56   : > { %923 = vsyncadd (%p1192_p1), [#allocation6], 4294964224  ;;  %369 = vmatprep.mubr.bf16.mxu0 %v948_v0  ;;  %337 = vmatprep.subr.bf16.mxu0 %v778_v1  ;;  %v781_v3 = vld [vmem:[#allocation5 + $0x1c] ss:$12 sps:$4 sm:$0xff]   ;;  %v783_v4 = vld [vmem:[#allocation5 + $0x18] ss:$12 sps:$4 sm:$0xff]  }
  0x57   : > { %338 = vmatpush1.bf16.msra.mxu0 %v780_v2  ;;  %v784_v5 = vld [vmem:[#allocation5 + $0x34] ss:$12 sps:$4 sm:$0xff]   ;;  %v786_v6 = vld [vmem:[#allocation5 + $0x30] ss:$12 sps:$4 sm:$0xff]   ;;  %v787_v7 = vld [vmem:[#allocation5 + $0x4c] ss:$12 sps:$4 sm:$0xff]   ;;  %684 = vmatprep.subr.bf16.mxu1 %v949_v19 }
  0x58   : > { %339 = vmatprep.subr.bf16.mxu0 %v781_v3  ;;  %v789_v8 = vld [vmem:[#allocation5 + $0x48] ss:$12 sps:$4 sm:$0xff]   ;;  %v790_v9 = vld [vmem:[#allocation5 + $0x64] ss:$12 sps:$4 sm:$0xff]   ;;  %v792_v10 = vld [vmem:[#allocation5 + $0x60] ss:$12 sps:$4 sm:$0xff]  }
  0x59   : > { %v793_v11 = vld [vmem:[#allocation5 + $0x7c] ss:$12 sps:$4 sm:$0xff]   ;;  %v795_v12 = vld [vmem:[#allocation5 + $0x78] ss:$12 sps:$4 sm:$0xff]   ;;  %v796_v13 = vld [vmem:[#allocation5 + $0x94] ss:$12 sps:$4 sm:$0xff]  }
  0x5a   : > { %v798_v14 = vld [vmem:[#allocation5 + $0x90] ss:$12 sps:$4 sm:$0xff]   ;;  %v799_v15 = vld [vmem:[#allocation5 + $0xac] ss:$12 sps:$4 sm:$0xff]   ;;  %v801_v16 = vld [vmem:[#allocation5 + $0xa8] ss:$12 sps:$4 sm:$0xff]  }
  0x5b   : > { %340 = vmatpush1.bf16.msra.mxu0 %v783_v4  ;;  %v175_v17 = vld [vmem:[%s1109_s29] sm:$0xff]  ;;  %vm950_vm0 = vmmov 0   ;;  %vm461_vm1 = vcmask 64512   ;;  %v803_v32 = vld [vmem:[#allocation5 + $0x20] ss:$12 sps:$4 sm:$0xff]   ;;  %vm493_vm2 = vcmask 1043456  }
  0x5c   : > { %341 = vmatprep.subr.bf16.mxu0 %v784_v5  ;;  %v176_v18 = vpack.c.bf16 %v175_v17, %v175_v17  ;;  %700 = vmatprep.mubr.msk.bf16.mxu1 %vm950_vm0, %v949_v19  ;;  %v802_v31 = vld [vmem:[#allocation5 + $0x8] ss:$12 sps:$4 sm:$0xff]   ;;  %v804_v33 = vld [vmem:[#allocation5 + $0x38] ss:$12 sps:$4 sm:$0xff]   ;;  %v805_v34 = vld [vmem:[#allocation5 + $0x50] ss:$12 sps:$4 sm:$0xff]  }
  0x5d   : > { %685 = vmatpush3.bf16.msra.mxu1 %v802_v31  ;;  %v806_v35 = vld [vmem:[#allocation5 + $0x68] ss:$12 sps:$4 sm:$0xff]   ;;  %v807_v36 = vld [vmem:[#allocation5 + $0x80] ss:$12 sps:$4 sm:$0xff]   ;;  %v808_v37 = vld [vmem:[#allocation5 + $0x98] ss:$12 sps:$4 sm:$0xff]  }
  0x5e   : > { %686 = vmatprep.subr.bf16.mxu1 %v949_v19  ;;  %v809_v38 = vld [vmem:[#allocation5 + $0xb0] ss:$12 sps:$4 sm:$0xff]   ;;  %s173_s15 = scalar_lea.vmem [#allocation7], %s639_s26  ;;  %s668_s27 = sshll.u32 %s988_s13, 7 }
  0x5f   : > { %342 = vmatpush1.bf16.msra.mxu0 %v786_v6  ;;  %s552_s17 = sshll.u32 %s173_s15, 4  ;;  %s1134_s28 = scalar_lea.hbm %s1178_s2, %s668_s27  ;;  %s1129_s17 = int_to_ptr.vmem [resolvable:$true] %s552_s17 }
  0x60   : > { %343 = vmatprep.subr.bf16.mxu0 %v787_v7  ;;  %s539_s30 = scalar_lea.sflag [#allocation4], %s1103_s20  ;;  %s872_s3 = scalar_lea.vmem %s1129_s17, 128 }
  0x61   : > { %687 = vmatpush3.bf16.msra.mxu1 %v803_v32  ;;  %p873_p4 = scmp.ne.s32.totalorder %s1129_s17, %s872_s3  ;;  %s951_s13 = smov [#allocation7]  }
  0x62   : > { %688 = vmatprep.subr.bf16.mxu1 %v949_v19  ;;  %s876_s4 = sshll.u32 %s951_s13, 4  ;;  %s877_s4 = int_to_ptr.vmem [resolvable:$false] %s876_s4 }
  0x63   : > { %344 = vmatpush1.bf16.msra.mxu0 %v789_v8  ;;  %p874_p6 = pnand %p873_p4, %p1058_p12  ;;  %s878_s5 = scalar_lea.vmem %s877_s4, 256 }
  0x64   : > { %345 = vmatprep.subr.bf16.mxu0 %v790_v9  ;;  %p879_p10 = scmp.lt.s32.totalorder %s1129_s17, %s877_s4  ;;  %p880_p13 = scmp.lt.s32.totalorder %s878_s5, %s872_s3 }
  0x65   : > { %689 = vmatpush3.bf16.msra.mxu1 %v804_v33  ;;  %p875_p8 = pneg %p874_p6 }
  0x66   : > { %690 = vmatprep.subr.bf16.mxu1 %v949_v19  ;;  %p881_p3 = por %p880_p13, %p879_p10 }
  0x67   : > { %346 = vmatpush1.bf16.msra.mxu0 %v792_v10 }
  0x68   : > { %347 = vmatprep.subr.bf16.mxu0 %v793_v11  ;;  %p882_p7 = pnand %p881_p3, %p875_p8 }
  0x69   : > { %691 = vmatpush3.bf16.msra.mxu1 %v805_v34 }
  0x6a   : > { %692 = vmatprep.subr.bf16.mxu1 %v949_v19 }
  0x6b   : > { %348 = vmatpush1.bf16.msra.mxu0 %v795_v12 }
  0x6c   : > { %349 = vmatprep.subr.bf16.mxu0 %v796_v13 }
  0x6d   : > { %693 = vmatpush3.bf16.msra.mxu1 %v806_v35 }
  0x6e   : > { %694 = vmatprep.subr.bf16.mxu1 %v949_v19 }
  0x6f   : > { %350 = vmatpush1.bf16.msra.mxu0 %v798_v14 }
  0x70   : > { %351 = vmatprep.subr.bf16.mxu0 %v799_v15 }
  0x71   : > { %695 = vmatpush3.bf16.msra.mxu1 %v807_v36 }
  0x72   : > { %696 = vmatprep.subr.bf16.mxu1 %v949_v19 }
  0x73   : > { %352 = vmatpush1.bf16.msra.mxu0 %v801_v16 }
  0x74   : > { %704 = vmatprep.subr.bf16.mxu0 %v949_v19 }
  0x75   : > { %697 = vmatpush3.bf16.msra.mxu1 %v808_v37 }
  0x76   : > { %370 = vmatmul.mubr.bf16.vlgmr.msra.gmra.mrb[0].mxu0 %v176_v18  ;;  %698 = vmatprep.subr.bf16.mxu1 %v949_v19 }
  0x77   : > { %706 = vmatprep.mubr.msk.bf16.mxu0 %vm950_vm0, %v949_v19 }
  0x79   : > { %699 = vmatpush3.bf16.msra.mxu1 %v809_v38 }
  0x7a   : > { %710 = vmatprep.subr.bf16.mxu1 %v949_v19 }
  0x7c   : > { %701 = vmatmul.mubr.bf16.vlgmr.msra.gmra.mrb[0].mxu1 %v176_v18 }
  0x7d   : > { %712 = vmatprep.mubr.msk.bf16.mxu1 %vm950_vm0, %v949_v19 }
 0x149   : > { %v371_v20 = vpop.f32.mrb[0].mxu0 }
 0x14a   : > { %v418_v21 = vpack.c.bf16 %v371_v20, %v371_v20  ;;  %v373_v22 = vpop.f32.mrb[1].mxu0 }
 0x14b   : > { %v375_v23 = vpop.f32.mrb[2].mxu0  ;;  %v419_v25 = vpack.c.bf16 %v373_v22, %v373_v22 }
 0x14c   : > { %v376_v24 = vpop.f32.mrb[3].mxu0  ;;  %705 = vmatpush3.bf16.xpose.msra.mxu0 %v418_v21 }
 0x14f   : > { %v412_v44 = vpop.f32.mrb[0].mxu1 }
 0x150   : > { %v420_v45 = vpack.c.bf16 %v412_v44, %v412_v44  ;;  %v702_v46 = vpop.f32.mrb[1].mxu1 }
 0x151   : > { %v415_v47 = vpop.f32.mrb[2].mxu1 }
 0x152   : > { %v495_v48 = vsel %vm493_vm2, %v420_v45, 0  ;;  %v703_v49 = vpop.f32.mrb[3].mxu1 }
 0x153   : > { %707 = vmatmul.mubr.bf16.vlgmr.msra.gmra.mrb[4].mxu0 %v419_v25  ;;  %711 = vmatpush3.bf16.msra.mxu1 %v495_v48 }
 0x226   : > { %v455_v26 = vpop.f32.mrb[4].mxu0 }
 0x227   : > { %v708_v27 = vpop.f32.mrb[5].mxu0  ;;  %v462_v28 = vsel %vm461_vm1, %v455_v26, -inf }
 0x228   : > { %463 = vmax.xlane.f32.xlu0 %v462_v28  ;;  %v458_v29 = vpop.f32.mrb[6].mxu0 }
 0x229   : > { %v709_v30 = vpop.f32.mrb[7].mxu0 }
 0x2b5   : > { %v464_v39 = vpop.xlane.xlu0 %463 }
 0x2b6   : > { %v465_v40 = vsub.f32 %v455_v26, %v464_v39 }
 0x2b8   : > { %v466_v41 = vmul.f32 1.442695, %v465_v40 }
 0x2ba   : > { %810 = vpow2.f32 %v466_v41 }
 0x2c4   : > { %v811_v42 = vpop.eup %810 }
 0x2c5   : > { %v468_v43 = vsel %vm461_vm1, %v811_v42, 0.0 }
 0x2c6   : > { %469 = vadd.xlane.f32.xlu0 %v468_v43 }
 0x353   : > { %v470_v50 = vpop.xlane.xlu0 %469 }
 0x354   : > { %812 = vrcp.f32 %v470_v50 }
 0x35e   : > { %v813_v51 = vpop.eup %812 }
 0x35f   : > { %v472_v52 = vmul.f32 %v813_v51, %v811_v42 }
 0x361   : > { %v473_v53 = vpack.c.bf16 %v472_v52, %v472_v52 }
 0x363   : > { %474 = vxpose.xlu1.c.b16.start.end [1/1] (short) (narrow) %v473_v53, 16 }
 0x3c9   : > { %v482_v54 = vpop.trf.xlu1 }
 0x3ca   : > { %713 = vmatmul.mubr.msk.bf16.vlgmr.msra.gmra.mrb[4].mxu1 %vm461_vm1, %v482_v54 }
 0x49d   : > { %v531_v55 = vpop.f32.mrb[4].mxu1 }
 0x49e   : > { %537 = vst [vmem:[%s173_s15] sm:$0xff] %v531_v55  ;;  %v714_v56 = vpop.f32.mrb[5].mxu1 }
 0x49f   : > { %v534_v57 = vpop.f32.mrb[6].mxu1 }
 0x4a0   : > { %885 = shalt.err (!%p882_p7)
}
 0x4a1   : > { %s886_s6 = scalar_lea.hbm %s1134_s28, 128  ;;  %s890_s24 = scalar_lea.hbm %s1178_s2, 256 }
 0x4a2   : > { %p887_p9 = scmp.ne.s32.totalorder %s1134_s28, %s886_s6  ;;  %p891_p0 = scmp.lt.u32.totalorder %s1134_s28, %s1178_s2 }
 0x4a3   : > { %p892_p11 = scmp.lt.u32.totalorder %s890_s24, %s886_s6  ;;  %p894_p4 = scmp.lt.u32.totalorder %s886_s6, %s1134_s28 }
 0x4a4   : > { %p888_p2 = pnand %p887_p9, %p1058_p12 }
 0x4a5   : > { %p893_p1 = por %p892_p11, %p891_p0 }
 0x4a6   : > { %p889_p5 = pneg %p888_p2 }
 0x4a7   : > { %p895_p6 = por %p894_p4, %p893_p1 }
 0x4a9   : > { %p896_p8 = pnand %p895_p6, %p889_p5 }
 0x4ab   : > { %899 = shalt.err (!%p896_p8)
}
 0x4ac   : > { %722 = dma.vmem_to_hbm [thread:$0]  (%p1058_p12), %s1129_s17, 128, %s1134_s28, %s539_s30   ;;  %v715_v58 = vpop.f32.mrb[7].mxu1 }
 0x4ad PF: > { %s564_s26 = sand.u32 1, %s930_s9   ;;  %p1193_p10 = scmp.ne.s32.totalorder %s1183_s16, 0 }
 0x4ae   : > { %p1194_p13 = scmp.ge.s32.totalorder %s942_s12, 2  ;;  %s565_s19 = scalar_lea.sflag [#allocation4], %s564_s26 }
 0x4b0   : > { %p733_p3 = pnand %p1194_p13, %p1193_p10 }
 0x4b2   : > { %925 = dma.done.wait (!%p733_p3), %s565_s19, 128  }
 0x4b3   : > { %927 = vsyncadd (!%p733_p3), %s565_s19, 4294967168  ;;  %p16_p7 = scmp.ge.s32.totalorder %s1023_s21, 4   ;;  %s1195_s9 = smov %s934_s10 }
 0x4b4   : > { %s1196_s10 = smov %s938_s11  ;;  %s1197_s11 = smov %s1054_s8 }
 0x4b5   : > { %s1198_s12 = smov %s1023_s21  ;;  %18 = sbr.rel (!%p16_p7) target bundleno = 6 (0x6), region = 77 }
 0x4bc   :  { %570 = vsyncpa [#allocation3], 1 }
 0x4bd   :  { %572 = vsyncpa [#allocation3 + $0x1], 1 }
 0x4be   :  { %573 = vsyncpa [#allocation6], 1 }
 0x4bf   :  { %574 = vsyncpa [#allocation4], 1 }
 0x4c0   :  { %576 = vsyncpa [#allocation4 + $0x1], 1 }

</bundles_post_ra>
